<compile_context>
chip_gen: v7x
topology: tpu7x:2x2x1
jax: 0.10.0
libtpu: 0.0.40
codegen_flags: <defaults>
</compile_context>

<pallas_src>
import functools

import jax
import jax.numpy as jnp
from jax.experimental import pallas as pl
from jax.experimental.pallas import tpu as pltpu


def _round_up(n: int, m: int) -> int:
    return ((n + m - 1) // m) * m


def _autoencoder_kernel(x_ref,
                        w1_ref, b1_ref,
                        w2_ref, b2_ref,
                        w3_ref, b3_ref,
                        w4_ref, b4_ref,
                        recon_ref, z_ref):
    """4-layer MLP (encoder + decoder) for one batch tile.

    x arrives as f32 and is cast to bf16 on the VPU; weights are bf16
    (MXU-native); biases and accumulation are f32. Weight/bias refs are full
    arrays resident in VMEM (grid-invariant).
    """
    x = x_ref[...].astype(jnp.bfloat16)                                  # (tb, F) bf16

    # ---- encoder ----
    h1 = jnp.dot(x, w1_ref[...], preferred_element_type=jnp.float32) + b1_ref[...]
    h1 = jnp.maximum(h1, 0.0).astype(jnp.bfloat16)                       # ReLU -> bf16
    z = jnp.dot(h1, w2_ref[...], preferred_element_type=jnp.float32) + b2_ref[...]
    z_ref[...] = z.astype(z_ref.dtype)

    # ---- decoder ----
    # NOTE: layer-2/3 fusion (w23 = w2 @ w3) intentionally skipped to keep the
    # two-stage bf16 numerics of the original module.
    zb = z.astype(jnp.bfloat16)
    h2 = jnp.dot(zb, w3_ref[...], preferred_element_type=jnp.float32) + b3_ref[...]
    h2 = jnp.maximum(h2, 0.0).astype(jnp.bfloat16)                       # ReLU -> bf16
    recon = jnp.dot(h2, w4_ref[...], preferred_element_type=jnp.float32) + b4_ref[...]
    recon_ref[...] = recon.astype(recon_ref.dtype)


def _vmem_budget_bytes() -> int:
    """Generation-aware VMEM budget (leave headroom below physical capacity)."""
    try:
        cap = int(pltpu.get_tpu_info().vmem_capacity_bytes)
    except Exception:
        cap = 64 * 1024 * 1024                       # conservative (v7x-sized) fallback
    if cap <= 64 * 1024 * 1024:
        return 48 * 1024 * 1024                      # v7x: 64 MiB per TensorCore
    return min(100 * 1024 * 1024, int(cap * 0.78))   # v5e / v6e: 128 MiB


def _choose_batch_tile(B, F, L, H, block_b, budget, weight_bytes):
    """Largest batch tile that (a) fits the VMEM budget and (b) leaves >= ~8
    grid steps for software pipelining when B is large enough."""
    # Per-row working set: x f32 (2 bufs) + recon f32 (2 bufs) + z f32 (2 bufs)
    # + f32 intermediates + bf16 copies of matmul operands.
    per_row = 22 * F + 14 * L + 12 * H
    per_row = int(per_row * 1.25) + 256              # safety margin
    avail = max(budget - weight_bytes, per_row * 16)
    tb_vmem = max(16, (avail // per_row) // 16 * 16)

    target_steps = 8                                  # >= 4 steps per core on dual-core chips
    tb_steps = max(16, _round_up(pl.cdiv(B, target_steps), 16))

    return max(16, min(block_b, tb_vmem, tb_steps))


@functools.partial(jax.jit, static_argnames=("block_b",))
def autoencoder_forward(x, params, *, block_b=1024):
    """Pallas autoencoder forward pass.

    x:      (B, feature_dim) float32
    params: dict of w1,b1,w2,b2,w3,b3,w4,b4 (weights (in, out); biases (out,))
    returns (reconstruction, z) in float32
    """
    B, F = x.shape
    H = params["w1"].shape[1]          # 256
    L = params["w2"].shape[1]          # latent_dim

    f32, bf16 = jnp.float32, jnp.bfloat16

    # Resident operand footprint (bf16 weights + f32 biases).
    weight_bytes = 2 * (F * H + H * L + L * H + H * F) + 4 * (2 * H + L + F)

    budget = _vmem_budget_bytes()
    tb = _choose_batch_tile(B, F, L, H, block_b, budget, weight_bytes)

    # Pad batch only if needed (no pad/cast round trip over x otherwise).
    Bp = _round_up(B, tb)
    xp = x if Bp == B else jnp.pad(x, ((0, Bp - B), (0, 0)))
    grid = (Bp // tb,)

    w1 = params["w1"].astype(bf16)
    b1 = params["b1"].reshape(1, -1).astype(f32)
    w2 = params["w2"].astype(bf16)
    b2 = params["b2"].reshape(1, -1).astype(f32)
    w3 = params["w3"].astype(bf16)
    b3 = params["b3"].reshape(1, -1).astype(f32)
    w4 = params["w4"].astype(bf16)
    b4 = params["b4"].reshape(1, -1).astype(f32)

    # Grid-invariant operands: place fully in VMEM once (no double-buffering).
    resident = pl.BlockSpec(memory_space=pltpu.MemorySpace.VMEM)

    recon_pad, z_pad = pl.pallas_call(
        _autoencoder_kernel,
        out_shape=(
            jax.ShapeDtypeStruct((Bp, F), f32),   # reconstruction
            jax.ShapeDtypeStruct((Bp, L), f32),   # z
        ),
        grid_spec=pltpu.PrefetchScalarGridSpec(
            num_scalar_prefetch=0,
            grid=grid,
            in_specs=[
                pl.BlockSpec((tb, F), lambda i: (i, 0)),   # x tile (pipelined over batch)
                resident, resident,                        # w1, b1
                resident, resident,                        # w2, b2
                resident, resident,                        # w3, b3
                resident, resident,                        # w4, b4
            ],
            out_specs=[
                pl.BlockSpec((tb, F), lambda i: (i, 0)),   # reconstruction tile
                pl.BlockSpec((tb, L), lambda i: (i, 0)),   # z tile
            ],
        ),
        compiler_params=pltpu.CompilerParams(
            dimension_semantics=("parallel",),
            vmem_limit_bytes=int(budget),
        ),
    )(xp, w1, b1, w2, b2, w3, b3, w4, b4)

    if Bp != B:
        recon_pad = recon_pad[:B]
        z_pad = z_pad[:B]
    return recon_pad, z_pad


def init_params(key, feature_dim, latent_dim, hidden=256):
    """Deterministic init mimicking PyTorch nn.Linear (uniform +/- 1/sqrt(fan_in))."""
    def linear(k, fan_in, fan_out):
        kw, kb = jax.random.split(k)
        bound = 1.0 / jnp.sqrt(fan_in)
        w = jax.random.uniform(kw, (fan_in, fan_out), jnp.float32, -bound, bound)
        b = jax.random.uniform(kb, (fan_out,), jnp.float32, -bound, bound)
        return w, b

    k1, k2, k3, k4 = jax.random.split(key, 4)
    w1, b1 = linear(k1, feature_dim, hidden)
    w2, b2 = linear(k2, hidden, latent_dim)
    w3, b3 = linear(k3, latent_dim, hidden)
    w4, b4 = linear(k4, hidden, feature_dim)
    return dict(w1=w1, b1=b1, w2=w2, b2=b2, w3=w3, b3=b3, w4=w4, b4=b4)


def reference_forward(x, p):
    """Pure-JAX reference mirroring the kernel's bf16-operand / f32-accum scheme."""
    bf = lambda a: a.astype(jnp.bfloat16).astype(jnp.float32)
    h1 = jnp.maximum(bf(x) @ bf(p["w1"]) + p["b1"], 0.0)
    z = bf(h1) @ bf(p["w2"]) + p["b2"]
    h2 = jnp.maximum(bf(z) @ bf(p["w3"]) + p["b3"], 0.0)
    recon = bf(h2) @ bf(p["w4"]) + p["b4"]
    return recon, z


if __name__ == "__main__":
    batch = 8
    feature_dim = 64
    latent_dim = 32

    key = jax.random.PRNGKey(0)
    kx, kp = jax.random.split(key)
    x = jax.random.normal(kx, (batch, feature_dim), jnp.float32)
    params = init_params(kp, feature_dim, latent_dim)

    recon, z = autoencoder_forward(x, params)
    jax.block_until_ready((recon, z))

    recon_ref, z_ref = reference_forward(x, params)
    assert recon.shape == (batch, feature_dim)
    assert z.shape == (batch, latent_dim)
    assert jnp.allclose(recon, recon_ref, atol=1e-2, rtol=1e-2), \
        float(jnp.max(jnp.abs(recon - recon_ref)))
    assert jnp.allclose(z, z_ref, atol=1e-2, rtol=1e-2), \
        float(jnp.max(jnp.abs(z - z_ref)))

    print("KERNEL_OK")
</pallas_src>

<mosaic_0001>
module attributes {stable_mosaic.version = 11 : i64} {
  func.func @_autoencoder_kernel(%arg0: i32, %arg1: memref<16x64xf32, #tpu.memory_space<vmem>>, %arg2: memref<64x256xbf16, #tpu.memory_space<vmem>>, %arg3: memref<1x256xf32, #tpu.memory_space<vmem>>, %arg4: memref<256x32xbf16, #tpu.memory_space<vmem>>, %arg5: memref<1x32xf32, #tpu.memory_space<vmem>>, %arg6: memref<32x256xbf16, #tpu.memory_space<vmem>>, %arg7: memref<1x256xf32, #tpu.memory_space<vmem>>, %arg8: memref<256x64xbf16, #tpu.memory_space<vmem>>, %arg9: memref<1x64xf32, #tpu.memory_space<vmem>>, %arg10: memref<16x64xf32, #tpu.memory_space<vmem>>, %arg11: memref<16x32xf32, #tpu.memory_space<vmem>>) attributes {dimension_semantics = [#tpu.dimension_semantics<parallel>], iteration_bounds = array<i64: 1>, scalar_prefetch = 0 : i64, scratch_operands = 0 : i64, tpu.core_type = #tpu.core_type<tc>, window_params = [{transform_indices = @transform_0, window_bounds = array<i64: 16, 64>}, {pipeline_mode = #tpu.pipeline_mode<synchronous>, transform_indices = @transform_1, window_bounds = array<i64: 64, 256>}, {pipeline_mode = #tpu.pipeline_mode<synchronous>, transform_indices = @transform_2, window_bounds = array<i64: 1, 256>}, {pipeline_mode = #tpu.pipeline_mode<synchronous>, transform_indices = @transform_3, window_bounds = array<i64: 256, 32>}, {pipeline_mode = #tpu.pipeline_mode<synchronous>, transform_indices = @transform_4, window_bounds = array<i64: 1, 32>}, {pipeline_mode = #tpu.pipeline_mode<synchronous>, transform_indices = @transform_5, window_bounds = array<i64: 32, 256>}, {pipeline_mode = #tpu.pipeline_mode<synchronous>, transform_indices = @transform_6, window_bounds = array<i64: 1, 256>}, {pipeline_mode = #tpu.pipeline_mode<synchronous>, transform_indices = @transform_7, window_bounds = array<i64: 256, 64>}, {pipeline_mode = #tpu.pipeline_mode<synchronous>, transform_indices = @transform_8, window_bounds = array<i64: 1, 64>}, {transform_indices = @transform_9, window_bounds = array<i64: 16, 64>}, {transform_indices = @transform_10, window_bounds = array<i64: 16, 32>}]} {
    %c0 = arith.constant 0 : index
    %c0_0 = arith.constant 0 : index
    %0 = vector.load %arg1[%c0, %c0_0] : memref<16x64xf32, #tpu.memory_space<vmem>>, vector<16x64xf32>
    %1 = arith.truncf %0 : vector<16x64xf32> to vector<16x64xbf16>
    %c0_1 = arith.constant 0 : index
    %c0_2 = arith.constant 0 : index
    %2 = vector.load %arg2[%c0_1, %c0_2] : memref<64x256xbf16, #tpu.memory_space<vmem>>, vector<64x256xbf16>
    %cst = arith.constant dense<0.000000e+00> : vector<16x256xf32>
    %3 = tpu.matmul %1, %2, %cst {dimension_numbers = #tpu.dot_dimension_numbers<[1], [0], [0], [1], [0, 0, 1, 1], [], []>} : vector<16x64xbf16>, vector<64x256xbf16>, vector<16x256xf32> -> vector<16x256xf32>
    %c0_3 = arith.constant 0 : index
    %c0_4 = arith.constant 0 : index
    %4 = vector.load %arg3[%c0_3, %c0_4] : memref<1x256xf32, #tpu.memory_space<vmem>>, vector<1x256xf32>
    %5 = vector.broadcast %4 : vector<1x256xf32> to vector<16x256xf32>
    %6 = arith.addf %3, %5 : vector<16x256xf32>
    %cst_5 = arith.constant 0.000000e+00 : f32
    %7 = vector.broadcast %cst_5 : f32 to vector<16x256xf32>
    %8 = arith.maximumf %6, %7 : vector<16x256xf32>
    %9 = arith.truncf %8 : vector<16x256xf32> to vector<16x256xbf16>
    %c0_6 = arith.constant 0 : index
    %c0_7 = arith.constant 0 : index
    %10 = vector.load %arg4[%c0_6, %c0_7] : memref<256x32xbf16, #tpu.memory_space<vmem>>, vector<256x32xbf16>
    %cst_8 = arith.constant dense<0.000000e+00> : vector<16x32xf32>
    %11 = tpu.matmul %9, %10, %cst_8 {dimension_numbers = #tpu.dot_dimension_numbers<[1], [0], [0], [1], [0, 0, 1, 1], [], []>} : vector<16x256xbf16>, vector<256x32xbf16>, vector<16x32xf32> -> vector<16x32xf32>
    %c0_9 = arith.constant 0 : index
    %c0_10 = arith.constant 0 : index
    %12 = vector.load %arg5[%c0_9, %c0_10] : memref<1x32xf32, #tpu.memory_space<vmem>>, vector<1x32xf32>
    %13 = vector.broadcast %12 : vector<1x32xf32> to vector<16x32xf32>
    %14 = arith.addf %11, %13 : vector<16x32xf32>
    %c0_11 = arith.constant 0 : index
    %c0_12 = arith.constant 0 : index
    %15 = vector.load %arg11[%c0_11, %c0_12] : memref<16x32xf32, #tpu.memory_space<vmem>>, vector<16x32xf32>
    tpu.vector_store %arg11[%c0_11, %c0_12], %14 {strides = array<i32>} : memref<16x32xf32, #tpu.memory_space<vmem>>, vector<16x32xf32>,
    %16 = arith.truncf %14 : vector<16x32xf32> to vector<16x32xbf16>
    %c0_13 = arith.constant 0 : index
    %c0_14 = arith.constant 0 : index
    %17 = vector.load %arg6[%c0_13, %c0_14] : memref<32x256xbf16, #tpu.memory_space<vmem>>, vector<32x256xbf16>
    %cst_15 = arith.constant dense<0.000000e+00> : vector<16x256xf32>
    %18 = tpu.matmul %16, %17, %cst_15 {dimension_numbers = #tpu.dot_dimension_numbers<[1], [0], [0], [1], [0, 0, 1, 1], [], []>} : vector<16x32xbf16>, vector<32x256xbf16>, vector<16x256xf32> -> vector<16x256xf32>
    %c0_16 = arith.constant 0 : index
    %c0_17 = arith.constant 0 : index
    %19 = vector.load %arg7[%c0_16, %c0_17] : memref<1x256xf32, #tpu.memory_space<vmem>>, vector<1x256xf32>
    %20 = vector.broadcast %19 : vector<1x256xf32> to vector<16x256xf32>
    %21 = arith.addf %18, %20 : vector<16x256xf32>
    %cst_18 = arith.constant 0.000000e+00 : f32
    %22 = vector.broadcast %cst_18 : f32 to vector<16x256xf32>
    %23 = arith.maximumf %21, %22 : vector<16x256xf32>
    %24 = arith.truncf %23 : vector<16x256xf32> to vector<16x256xbf16>
    %c0_19 = arith.constant 0 : index
    %c0_20 = arith.constant 0 : index
    %25 = vector.load %arg8[%c0_19, %c0_20] : memref<256x64xbf16, #tpu.memory_space<vmem>>, vector<256x64xbf16>
    %cst_21 = arith.constant dense<0.000000e+00> : vector<16x64xf32>
    %26 = tpu.matmul %24, %25, %cst_21 {dimension_numbers = #tpu.dot_dimension_numbers<[1], [0], [0], [1], [0, 0, 1, 1], [], []>} : vector<16x256xbf16>, vector<256x64xbf16>, vector<16x64xf32> -> vector<16x64xf32>
    %c0_22 = arith.constant 0 : index
    %c0_23 = arith.constant 0 : index
    %27 = vector.load %arg9[%c0_22, %c0_23] : memref<1x64xf32, #tpu.memory_space<vmem>>, vector<1x64xf32>
    %28 = vector.broadcast %27 : vector<1x64xf32> to vector<16x64xf32>
    %29 = arith.addf %26, %28 : vector<16x64xf32>
    %c0_24 = arith.constant 0 : index
    %c0_25 = arith.constant 0 : index
    %30 = vector.load %arg10[%c0_24, %c0_25] : memref<16x64xf32, #tpu.memory_space<vmem>>, vector<16x64xf32>
    tpu.vector_store %arg10[%c0_24, %c0_25], %29 {strides = array<i32>} : memref<16x64xf32, #tpu.memory_space<vmem>>, vector<16x64xf32>,
    return
  }
  func.func @transform_0(%arg0: i32) -> (i32, i32) {
    %c0_i32 = arith.constant 0 : i32
    %c0_i32_0 = arith.constant 0 : i32
    return %arg0, %c0_i32 : i32, i32
  }
  func.func @transform_1(%arg0: i32) -> (i32, i32) {
    %c0_i32 = arith.constant 0 : i32
    %c0_i32_0 = arith.constant 0 : i32
    %c0_i32_1 = arith.constant 0 : i32
    return %c0_i32, %c0_i32_0 : i32, i32
  }
  func.func @transform_2(%arg0: i32) -> (i32, i32) {
    %c0_i32 = arith.constant 0 : i32
    %c0_i32_0 = arith.constant 0 : i32
    %c0_i32_1 = arith.constant 0 : i32
    return %c0_i32, %c0_i32_0 : i32, i32
  }
  func.func @transform_3(%arg0: i32) -> (i32, i32) {
    %c0_i32 = arith.constant 0 : i32
    %c0_i32_0 = arith.constant 0 : i32
    %c0_i32_1 = arith.constant 0 : i32
    return %c0_i32, %c0_i32_0 : i32, i32
  }
  func.func @transform_4(%arg0: i32) -> (i32, i32) {
    %c0_i32 = arith.constant 0 : i32
    %c0_i32_0 = arith.constant 0 : i32
    %c0_i32_1 = arith.constant 0 : i32
    return %c0_i32, %c0_i32_0 : i32, i32
  }
  func.func @transform_5(%arg0: i32) -> (i32, i32) {
    %c0_i32 = arith.constant 0 : i32
    %c0_i32_0 = arith.constant 0 : i32
    %c0_i32_1 = arith.constant 0 : i32
    return %c0_i32, %c0_i32_0 : i32, i32
  }
  func.func @transform_6(%arg0: i32) -> (i32, i32) {
    %c0_i32 = arith.constant 0 : i32
    %c0_i32_0 = arith.constant 0 : i32
    %c0_i32_1 = arith.constant 0 : i32
    return %c0_i32, %c0_i32_0 : i32, i32
  }
  func.func @transform_7(%arg0: i32) -> (i32, i32) {
    %c0_i32 = arith.constant 0 : i32
    %c0_i32_0 = arith.constant 0 : i32
    %c0_i32_1 = arith.constant 0 : i32
    return %c0_i32, %c0_i32_0 : i32, i32
  }
  func.func @transform_8(%arg0: i32) -> (i32, i32) {
    %c0_i32 = arith.constant 0 : i32
    %c0_i32_0 = arith.constant 0 : i32
    %c0_i32_1 = arith.constant 0 : i32
    return %c0_i32, %c0_i32_0 : i32, i32
  }
  func.func @transform_9(%arg0: i32) -> (i32, i32) {
    %c0_i32 = arith.constant 0 : i32
    %c0_i32_0 = arith.constant 0 : i32
    return %arg0, %c0_i32 : i32, i32
  }
  func.func @transform_10(%arg0: i32) -> (i32, i32) {
    %c0_i32 = arith.constant 0 : i32
    %c0_i32_0 = arith.constant 0 : i32
    return %arg0, %c0_i32 : i32, i32
  }
}

</mosaic_0001>

<bundles_post_ra>
// kernel: autoencoder_forward.1
= control target key start
LH: loop header
LB: loop body
LE: loop exit
PB: predicated region body
PF: predicated region fallthrough
CT: control target
= control target key end

     0   :  { %v748_v1 = vmov 0   ;;  %vm98_vm0 = vcmask 523264   ;;  %v48_v28 = vlaneseq  ;;  %vm327_vm1 = vcmask 261120   ;;  %s981_s1 = inlined_call_operand.vmem [shape: bf16[64,256], index: 1, kind: input, shape index: {}]   ;;  %s982_s3 = inlined_call_operand.vmem [shape: bf16[256,32], index: 3, kind: input, shape index: {}]   ;;  %s983_s0 = inlined_call_operand.vmem [shape: f32[16,64], index: 0, kind: input, shape index: {}]   ;;  %s984_s2 = inlined_call_operand.vmem [shape: f32[1,256], index: 2, kind: input, shape index: {}]   ;;  %s985_s5 = inlined_call_operand.vmem [shape: bf16[32,256], index: 5, kind: input, shape index: {}]   ;;  %s986_s7 = inlined_call_operand.vmem [shape: bf16[256,64], index: 7, kind: input, shape index: {}]   ;;  %s987_s4 = inlined_call_operand.vmem [shape: f32[1,32], index: 4, kind: input, shape index: {}]   ;;  %s988_s10 = inlined_call_operand.vmem [shape: f32[16,32], index: 10, kind: output, shape index: {1}]   ;;  %s989_s6 = inlined_call_operand.vmem [shape: f32[1,256], index: 6, kind: input, shape index: {}]   ;;  %s990_s8 = inlined_call_operand.vmem [shape: f32[1,64], index: 8, kind: input, shape index: {}]   ;;  %s991_s9 = inlined_call_operand.vmem [shape: f32[16,64], index: 9, kind: output, shape index: {0}]  }
   0x1   :  { %v698_v0 = vld [vmem:[%s981_s1 + $0x4] ss:$8 sps:$4 sm:$0xff]   ;;  %134 = vmatprep.mubr.bf16.mxu1 %v748_v1  ;;  %402 = vmatprep.mubr.bf16.mxu0 %v748_v1  ;;  %v700_v2 = vld [vmem:[%s981_s1] ss:$8 sps:$4 sm:$0xff]   ;;  %v701_v3 = vld [vmem:[%s981_s1 + $0x14] ss:$8 sps:$4 sm:$0xff]  }
   0x2   :  { %102 = vmatprep.subr.bf16.mxu1 %v698_v0  ;;  %v703_v4 = vld [vmem:[%s981_s1 + $0x10] ss:$8 sps:$4 sm:$0xff]   ;;  %v704_v5 = vld [vmem:[%s981_s1 + $0x24] ss:$8 sps:$4 sm:$0xff]   ;;  %v706_v6 = vld [vmem:[%s981_s1 + $0x20] ss:$8 sps:$4 sm:$0xff]  }
   0x3   :  { %103 = vmatpush1.bf16.msra.mxu1 %v700_v2  ;;  %v707_v7 = vld [vmem:[%s981_s1 + $0x34] ss:$8 sps:$4 sm:$0xff]   ;;  %v709_v8 = vld [vmem:[%s981_s1 + $0x30] ss:$8 sps:$4 sm:$0xff]   ;;  %v35_v9 = vld [vmem:[%s983_s0] sm:$0xff]  ;;  %v883_v29 = vshrl.u32 %v48_v28, 7 }
   0x4   :  { %104 = vmatprep.subr.bf16.mxu1 %v701_v3  ;;  %v36_v10 = vld [vmem:[%s983_s0 + $0x8] sm:$0xff]  ;;  %v710_v11 = vld [vmem:[%s982_s3 + $0x40] sm:$0xff]   ;;  %v714_v16 = vld [vmem:[%s982_s3 + $0x50] sm:$0xff]  }
   0x5   :  { %v37_v12 = vpack.c.bf16 %v36_v10, %v35_v9  ;;  %v711_v13 = vld [vmem:[%s982_s3] sm:$0xff]   ;;  %v712_v14 = vld [vmem:[%s982_s3 + $0x48] sm:$0xff]   ;;  %v715_v17 = vld [vmem:[%s982_s3 + $0x10] sm:$0xff]   ;;  %v50_v30 = vsub.s32 0, %v883_v29  ;;  %v54_v32 = vsub.s32 1, %v883_v29 }
   0x6   :  { %v713_v15 = vld [vmem:[%s982_s3 + $0x8] sm:$0xff]   ;;  %v716_v18 = vld [vmem:[%s982_s3 + $0x58] sm:$0xff]   ;;  %v718_v20 = vld [vmem:[%s982_s3 + $0x60] sm:$0xff]  }
   0x7   :  { %105 = vmatpush1.bf16.msra.mxu1 %v703_v4  ;;  %v717_v19 = vld [vmem:[%s982_s3 + $0x18] sm:$0xff]   ;;  %v719_v21 = vld [vmem:[%s982_s3 + $0x20] sm:$0xff]   ;;  %v720_v22 = vld [vmem:[%s982_s3 + $0x68] sm:$0xff]  }
   0x8   :  { %106 = vmatprep.subr.bf16.mxu1 %v704_v5  ;;  %v721_v23 = vld [vmem:[%s982_s3 + $0x28] sm:$0xff]   ;;  %v722_v24 = vld [vmem:[%s982_s3 + $0x70] sm:$0xff]   ;;  %v724_v26 = vld [vmem:[%s982_s3 + $0x78] sm:$0xff]  }
   0x9   :  { %v723_v25 = vld [vmem:[%s982_s3 + $0x30] sm:$0xff]   ;;  %v725_v27 = vld [vmem:[%s982_s3 + $0x38] sm:$0xff]   ;;  %v46_v31 = vld [vmem:[%s984_s2] sm:$0x3] }
   0xa   :  { %v51_v33 = vrot.slane %v46_v31, %v50_v30  ;;  %v55_v34 = vrot.slane %v46_v31, %v54_v32  ;;  %v726_v49 = vld [vmem:[%s985_s5 + $0x4] ss:$8 sps:$4 sm:$0xff]   ;;  %v728_v50 = vld [vmem:[%s985_s5] ss:$8 sps:$4 sm:$0xff]   ;;  %v729_v51 = vld [vmem:[%s985_s5 + $0x14] ss:$8 sps:$4 sm:$0xff]  }
   0xb   :  { %107 = vmatpush1.bf16.msra.mxu1 %v706_v6  ;;  %370 = vmatprep.subr.bf16.mxu0 %v726_v49  ;;  %v731_v52 = vld [vmem:[%s985_s5 + $0x10] ss:$8 sps:$4 sm:$0xff]   ;;  %v732_v53 = vld [vmem:[%s986_s7 + $0x40] sm:$0xff]   ;;  %v734_v1 = vld [vmem:[%s986_s7 + $0x48] sm:$0xff]  }
   0xc   :  { %108 = vmatprep.subr.bf16.mxu1 %v707_v7  ;;  %371 = vmatpush1.bf16.msra.mxu0 %v728_v50  ;;  %v614_v55 = vld [vmem:[%s987_s4] ss:$0 sm:$0xff]  ;;  %v735_v2 = vld [vmem:[%s986_s7 + $0x8] sm:$0xff]   ;;  %v736_v3 = vld [vmem:[%s986_s7 + $0x50] sm:$0xff]  }
   0xd   :  { %372 = vmatprep.subr.bf16.mxu0 %v729_v51  ;;  %v733_v63 = vld [vmem:[%s986_s7] sm:$0xff]   ;;  %v737_v4 = vld [vmem:[%s986_s7 + $0x10] sm:$0xff]   ;;  %v738_v5 = vld [vmem:[%s986_s7 + $0x58] sm:$0xff]  }
   0xe   :  { %v739_v6 = vld [vmem:[%s986_s7 + $0x18] sm:$0xff]   ;;  %v740_v7 = vld [vmem:[%s986_s7 + $0x60] sm:$0xff]   ;;  %v742_v9 = vld [vmem:[%s986_s7 + $0x68] sm:$0xff]  }
   0xf   :  { %109 = vmatpush1.bf16.msra.mxu1 %v709_v8  ;;  %v741_v8 = vld [vmem:[%s986_s7 + $0x20] sm:$0xff]   ;;  %v743_v10 = vld [vmem:[%s986_s7 + $0x28] sm:$0xff]  }
  0x10   :  { %653 = vmatprep.subr.bf16.mxu1 %v710_v11  ;;  %373 = vmatpush1.bf16.msra.mxu0 %v731_v52  ;;  %v744_v11 = vld [vmem:[%s986_s7 + $0x70] sm:$0xff]   ;;  %v636_v29 = vld [vmem:[%s990_s8] ss:$0 sm:$0xff] }
  0x11   :  { %675 = vmatprep.subr.bf16.mxu0 %v732_v53 }
  0x12   :  { %613 = vmatmul.mubr.msk.bf16.vlgmr.msra.gmra.mrb[0].mxu1 %vm98_vm0, %v37_v12  ;;  %v745_v12 = vld [vmem:[%s986_s7 + $0x30] sm:$0xff]  }
  0x13   :  { %654 = vmatpush3.bf16.msra.mxu1 %v711_v13  ;;  %v746_v13 = vld [vmem:[%s986_s7 + $0x78] sm:$0xff]  }
  0x14   :  { %655 = vmatprep.subr.bf16.mxu1 %v712_v14  ;;  %v747_v14 = vld [vmem:[%s986_s7 + $0x38] sm:$0xff]  }
  0x17   :  { %656 = vmatpush3.bf16.msra.mxu1 %v713_v15  ;;  %v335_v15 = vld [vmem:[%s989_s6] sm:$0x3] }
  0x18   :  { %657 = vmatprep.subr.bf16.mxu1 %v714_v16  ;;  %v340_v16 = vrot.slane %v335_v15, %v50_v30 }
  0x1b   :  { %658 = vmatpush3.bf16.msra.mxu1 %v715_v17  ;;  %v344_v17 = vrot.slane %v335_v15, %v54_v32 }
  0x1c   :  { %659 = vmatprep.subr.bf16.mxu1 %v716_v18 }
  0x1f   :  { %660 = vmatpush3.bf16.msra.mxu1 %v717_v19 }
  0x20   :  { %661 = vmatprep.subr.bf16.mxu1 %v718_v20 }
  0x23   :  { %662 = vmatpush3.bf16.msra.mxu1 %v719_v21 }
  0x24   :  { %663 = vmatprep.subr.bf16.mxu1 %v720_v22 }
  0x27   :  { %664 = vmatpush3.bf16.msra.mxu1 %v721_v23 }
  0x28   :  { %665 = vmatprep.subr.bf16.mxu1 %v722_v24 }
  0x2b   :  { %666 = vmatpush3.bf16.msra.mxu1 %v723_v25 }
  0x2c   :  { %667 = vmatprep.subr.bf16.mxu1 %v724_v26 }
  0x2f   :  { %668 = vmatpush3.bf16.msra.mxu1 %v725_v27 }
  0xe5   :  { %v136_v35 = vpop.f32.mrb[0].mxu1 }
  0xe6   :  { %v137_v36 = vadd.f32 %v136_v35, %v51_v33  ;;  %v138_v37 = vpop.f32.mrb[1].mxu1 }
  0xe7   :  { %v139_v38 = vadd.f32 %v138_v37, %v55_v34  ;;  %v140_v39 = vpop.f32.mrb[2].mxu1 }
  0xe8   :  { %v141_v40 = vadd.f32 %v140_v39, %v51_v33  ;;  %v142_v41 = vpop.f32.mrb[3].mxu1  ;;  %v145_v43 = vmax.f32 %v137_v36, 0.0 }
  0xe9   :  { %v143_v42 = vadd.f32 %v142_v41, %v55_v34  ;;  %v146_v45 = vmax.f32 %v139_v38, 0.0 }
  0xea   :  { %v147_v44 = vmax.f32 %v141_v40, 0.0 }
  0xeb   :  { %v148_v46 = vmax.f32 %v143_v42, 0.0 }
  0xec   :  { %v149_v47 = vpack.c.bf16 %v147_v44, %v145_v43 }
  0xed   :  { %v150_v48 = vpack.c.bf16 %v148_v46, %v146_v45 }
  0xef   :  { %318 = vmatprep.mubr.bf16.mxu1 %v150_v48 }
  0xf0   :  { %319 = vmatmul.mubr.bf16.vlgmr.msra.gmra.mrb[4].mxu1 %v149_v47 }
 0x1c3   :  { %v669_v54 = vpop.f32.mrb[4].mxu1 }
 0x1c4   :  { %v670_v56 = vpop.f32.mrb[5].mxu1 }
 0x1c5   :  { %v671_v57 = vadd.f32 %v670_v56, %v669_v54  ;;  %v672_v58 = vpop.f32.mrb[6].mxu1 }
 0x1c6   :  { %v673_v59 = vpop.f32.mrb[7].mxu1 }
 0x1c7   :  { %v321_v60 = vadd.f32 %v671_v57, %v614_v55  ;;  %v674_v61 = vadd.f32 %v673_v59, %v672_v58 }
 0x1c9   :  { %v324_v62 = vadd.f32 %v674_v61, %v614_v55  ;;  %328 = vst.msk [vmem:[%s988_s10] sm:$0xff] %vm327_vm1, %v321_v60 }
 0x1cb   :  { %v330_v0 = vpack.c.bf16 %v324_v62, %v321_v60  ;;  %329 = vst.msk [vmem:[%s988_s10 + $0x8] sm:$0xff] %vm327_vm1, %v324_v62 }
 0x1cd   :  { %635 = vmatmul.mubr.msk.bf16.vlgmr.msra.gmra.mrb[0].mxu0 %vm327_vm1, %v330_v0 }
 0x1ce   :  { %676 = vmatpush3.bf16.msra.mxu0 %v733_v63 }
 0x1cf   :  { %677 = vmatprep.subr.bf16.mxu0 %v734_v1 }
 0x1d2   :  { %678 = vmatpush3.bf16.msra.mxu0 %v735_v2 }
 0x1d3   :  { %679 = vmatprep.subr.bf16.mxu0 %v736_v3 }
 0x1d6   :  { %680 = vmatpush3.bf16.msra.mxu0 %v737_v4 }
 0x1d7   :  { %681 = vmatprep.subr.bf16.mxu0 %v738_v5 }
 0x1da   :  { %682 = vmatpush3.bf16.msra.mxu0 %v739_v6 }
 0x1db   :  { %683 = vmatprep.subr.bf16.mxu0 %v740_v7 }
 0x1de   :  { %684 = vmatpush3.bf16.msra.mxu0 %v741_v8 }
 0x1df   :  { %685 = vmatprep.subr.bf16.mxu0 %v742_v9 }
 0x1e2   :  { %686 = vmatpush3.bf16.msra.mxu0 %v743_v10 }
 0x1e3   :  { %687 = vmatprep.subr.bf16.mxu0 %v744_v11 }
 0x1e6   :  { %688 = vmatpush3.bf16.msra.mxu0 %v745_v12 }
 0x1e7   :  { %689 = vmatprep.subr.bf16.mxu0 %v746_v13 }
 0x1ea   :  { %690 = vmatpush3.bf16.msra.mxu0 %v747_v14 }
 0x2a0   :  { %v404_v18 = vpop.f32.mrb[0].mxu0 }
 0x2a1   :  { %v405_v19 = vadd.f32 %v404_v18, %v340_v16  ;;  %v406_v20 = vpop.f32.mrb[1].mxu0 }
 0x2a2   :  { %v407_v21 = vadd.f32 %v406_v20, %v344_v17  ;;  %v408_v22 = vpop.f32.mrb[2].mxu0 }
 0x2a3   :  { %v409_v23 = vadd.f32 %v408_v22, %v340_v16  ;;  %v410_v24 = vpop.f32.mrb[3].mxu0  ;;  %v413_v26 = vmax.f32 %v405_v19, 0.0 }
 0x2a4   :  { %v411_v25 = vadd.f32 %v410_v24, %v344_v17  ;;  %v414_v28 = vmax.f32 %v407_v21, 0.0 }
 0x2a5   :  { %v415_v27 = vmax.f32 %v409_v23, 0.0 }
 0x2a6   :  { %v416_v31 = vmax.f32 %v411_v25, 0.0 }
 0x2a7   :  { %v417_v33 = vpack.c.bf16 %v415_v27, %v413_v26 }
 0x2a8   :  { %v418_v34 = vpack.c.bf16 %v416_v31, %v414_v28 }
 0x2aa   :  { %586 = vmatprep.mubr.bf16.mxu0 %v418_v34 }
 0x2ab   :  { %587 = vmatmul.mubr.bf16.vlgmr.msra.gmra.mrb[4].mxu0 %v417_v33 }
 0x37e   :  { %v691_v30 = vpop.f32.mrb[4].mxu0 }
 0x37f   :  { %v692_v32 = vpop.f32.mrb[5].mxu0 }
 0x380   :  { %v693_v35 = vadd.f32 %v692_v32, %v691_v30  ;;  %v694_v36 = vpop.f32.mrb[6].mxu0 }
 0x381   :  { %v695_v37 = vpop.f32.mrb[7].mxu0 }
 0x382   :  { %v589_v38 = vadd.f32 %v693_v35, %v636_v29  ;;  %v696_v39 = vadd.f32 %v695_v37, %v694_v36 }
 0x384   :  { %595 = vst.msk [vmem:[%s991_s9] sm:$0xff] %vm98_vm0, %v589_v38  ;;  %v592_v40 = vadd.f32 %v696_v39, %v636_v29 }
 0x386   :  { %596 = vst.msk [vmem:[%s991_s9 + $0x8] sm:$0xff] %vm98_vm0, %v592_v40 }

</bundles_post_ra>
